<compile_context>
chip_gen: v7x
topology: tpu7x:2x2x1
jax: 0.10.0
libtpu: 0.0.40
codegen_flags: <defaults>
</compile_context>

<pallas_src>
import functools

import jax
import jax.numpy as jnp
from jax.experimental import pallas as pl
from jax.experimental.pallas import tpu as pltpu


def _round_up(x, m):
    return ((x + m - 1) // m) * m


def _cdiv(a, b):
    return -(-a // b)


def decoder_kernel(z_ref, w1_ref, b1_ref, w2_ref, b2_ref, out_ref, *, out_dim):
    # First linear (MXU, bf16 operands, f32 accumulation) + f32 tanh.
    z = z_ref[...]                                              # [TB, z_dim] f32
    h = jnp.dot(z.astype(jnp.bfloat16), w1_ref[...],
                preferred_element_type=jnp.float32)             # [TB, H] f32
    h = jnp.tanh(h + b1_ref[...])                               # f32 activations

    # Second linear (MXU, bf16 operands, f32 accumulation).
    o = jnp.dot(h.astype(jnp.bfloat16), w2_ref[...],
                preferred_element_type=jnp.float32)             # [TB, O] f32
    o = o + b2_ref[...]

    # Drop padded output lanes before the activation, then
    # sigmoid(x) = 0.5 * tanh(0.5 * x) + 0.5  -> single EUP op per vreg.
    o = o[:, :out_dim]                                          # [TB, 784]
    out_ref[...] = (0.5 * jnp.tanh(0.5 * o) + 0.5).astype(out_ref.dtype)


def prepare_decoder_params(w1, b1, w2, b2):
    """One-time repack: zero-pad feature dims to lane multiples of 128 and cast
    weights to bf16.  Padded hidden cols give tanh(0)=0 and their w2 rows are 0,
    so forward semantics are unchanged.  Call once, reuse across forward calls."""
    z_dim, hidden = w1.shape
    out_dim = w2.shape[1]
    H = _round_up(hidden, 128)    # 500 -> 512
    O = _round_up(out_dim, 128)   # 784 -> 896

    w1p = jnp.zeros((z_dim, H), jnp.bfloat16).at[:, :hidden].set(
        w1.astype(jnp.bfloat16))
    b1p = jnp.zeros((1, H), jnp.float32).at[:, :hidden].set(
        b1.reshape(1, -1).astype(jnp.float32))
    w2p = jnp.zeros((H, O), jnp.bfloat16).at[:hidden, :out_dim].set(
        w2.astype(jnp.bfloat16))
    b2p = jnp.zeros((1, O), jnp.float32).at[:, :out_dim].set(
        b2.reshape(1, -1).astype(jnp.float32))
    return (w1p, b1p, w2p, b2p), out_dim


def decoder_forward(z, padded_params, out_dim, *, block_rows=512):
    """z: [B, z_dim]; padded_params from prepare_decoder_params(); returns [B, 784]."""
    w1p, b1p, w2p, b2p = padded_params
    B, z_dim = z.shape
    H = w1p.shape[1]
    O = w2p.shape[1]

    # Balanced batch tiling: padding < 8 rows; force >= 2 grid steps for
    # mid/large batches so v7x's second TensorCore gets work and output
    # writeback of step i-1 overlaps compute of step i.
    n_tiles = max(1, _cdiv(B, block_rows))
    if n_tiles == 1 and B >= 512:
        n_tiles = 2
    TB = _round_up(_cdiv(B, n_tiles), 8)
    Bp = n_tiles * TB

    zf = z.astype(jnp.float32)
    if Bp == B:
        zp = zf
    else:
        zp = jnp.zeros((Bp, z_dim), jnp.float32).at[:B].set(zf)

    cost = pl.CostEstimate(
        flops=int(2 * Bp * (z_dim * H + H * O)),
        transcendentals=int(Bp * (H + out_dim)),
        bytes_accessed=int(
            2 * (w1p.size + w2p.size)        # bf16 weights
            + 4 * (b1p.size + b2p.size)      # f32 biases
            + 4 * zp.size                    # f32 input rows
            + 4 * Bp * out_dim),             # f32 output rows (unpadded lanes)
    )

    out = pl.pallas_call(
        functools.partial(decoder_kernel, out_dim=out_dim),
        out_shape=jax.ShapeDtypeStruct((Bp, out_dim), jnp.float32),
        grid_spec=pltpu.PrefetchScalarGridSpec(
            num_scalar_prefetch=0,
            grid=(n_tiles,),
            in_specs=[
                pl.BlockSpec((TB, z_dim), lambda i: (i, 0)),   # z rows (pipelined)
                pl.BlockSpec((z_dim, H), lambda i: (0, 0)),    # w1 (VMEM resident)
                pl.BlockSpec((1, H), lambda i: (0, 0)),        # b1 (resident)
                pl.BlockSpec((H, O), lambda i: (0, 0)),        # w2 (resident)
                pl.BlockSpec((1, O), lambda i: (0, 0)),        # b2 (resident)
            ],
            out_specs=pl.BlockSpec((TB, out_dim), lambda i: (i, 0)),
        ),
        compiler_params=pltpu.CompilerParams(
            dimension_semantics=("parallel",)),
        cost_estimate=cost,
    )(zp, w1p, b1p, w2p, b2p)

    return out if Bp == B else out[:B]


def init_decoder_params(key, z_dim=20, hidden_dim=500, out_dim=784):
    """Deterministic init matching nn.Linear's default U(-1/sqrt(fan_in), 1/sqrt(fan_in))."""
    k1, k2, k3, k4 = jax.random.split(key, 4)
    lim1 = 1.0 / jnp.sqrt(jnp.float32(z_dim))
    lim2 = 1.0 / jnp.sqrt(jnp.float32(hidden_dim))
    # stored as [in, out] (transposed vs. PyTorch's [out, in]) so y = x @ W + b.
    w1 = jax.random.uniform(k1, (z_dim, hidden_dim), jnp.float32, -lim1, lim1)
    b1 = jax.random.uniform(k2, (1, hidden_dim), jnp.float32, -lim1, lim1)
    w2 = jax.random.uniform(k3, (hidden_dim, out_dim), jnp.float32, -lim2, lim2)
    b2 = jax.random.uniform(k4, (1, out_dim), jnp.float32, -lim2, lim2)
    return w1, b1, w2, b2


if __name__ == "__main__":
    key = jax.random.PRNGKey(0)
    kz, kp = jax.random.split(key)

    batch, z_dim, hidden_dim, out_dim = 8, 20, 500, 784
    z = jax.random.normal(kz, (batch, z_dim), jnp.float32)
    w1, b1, w2, b2 = init_decoder_params(kp, z_dim, hidden_dim, out_dim)

    # One-time parameter repack (hoisted out of the forward path).
    padded_params, odim = prepare_decoder_params(w1, b1, w2, b2)

    mean = decoder_forward(z, padded_params, odim)
    mean = jax.block_until_ready(mean)
    assert mean.shape == (batch, out_dim), mean.shape

    # Reference 1: same bf16-weight / f32-accumulate math path (tight check).
    ref_h = jnp.tanh(
        jnp.dot(z.astype(jnp.bfloat16), w1.astype(jnp.bfloat16),
                preferred_element_type=jnp.float32) + b1)
    ref_bf16 = jax.nn.sigmoid(
        jnp.dot(ref_h.astype(jnp.bfloat16), w2.astype(jnp.bfloat16),
                preferred_element_type=jnp.float32) + b2)
    assert jnp.allclose(mean, ref_bf16, atol=1e-4, rtol=0), (
        float(jnp.max(jnp.abs(mean - ref_bf16))))

    # Reference 2: full-f32 math (loose check — bf16 weights lose ~3 mantissa decimals).
    ref_f32 = jax.nn.sigmoid(jnp.tanh(z @ w1 + b1) @ w2 + b2)
    assert jnp.allclose(mean, ref_f32, atol=3e-2, rtol=0), (
        float(jnp.max(jnp.abs(mean - ref_f32))))

    assert bool(jnp.all((mean >= 0.0) & (mean <= 1.0)))

    print("KERNEL_OK")
</pallas_src>

<mosaic_0001>
module attributes {stable_mosaic.version = 11 : i64} {
  func.func @decoder_kernel(%arg0: i32, %arg1: memref<8x20xf32, #tpu.memory_space<vmem>>, %arg2: memref<20x512xbf16, #tpu.memory_space<vmem>>, %arg3: memref<1x512xf32, #tpu.memory_space<vmem>>, %arg4: memref<512x896xbf16, #tpu.memory_space<vmem>>, %arg5: memref<1x896xf32, #tpu.memory_space<vmem>>, %arg6: memref<8x784xf32, #tpu.memory_space<vmem>>) attributes {dimension_semantics = [#tpu.dimension_semantics<parallel>], iteration_bounds = array<i64: 1>, scalar_prefetch = 0 : i64, scratch_operands = 0 : i64, tpu.core_type = #tpu.core_type<tc>, window_params = [{transform_indices = @transform_0, window_bounds = array<i64: 8, 20>}, {pipeline_mode = #tpu.pipeline_mode<synchronous>, transform_indices = @transform_1, window_bounds = array<i64: 20, 512>}, {pipeline_mode = #tpu.pipeline_mode<synchronous>, transform_indices = @transform_2, window_bounds = array<i64: 1, 512>}, {pipeline_mode = #tpu.pipeline_mode<synchronous>, transform_indices = @transform_3, window_bounds = array<i64: 512, 896>}, {pipeline_mode = #tpu.pipeline_mode<synchronous>, transform_indices = @transform_4, window_bounds = array<i64: 1, 896>}, {transform_indices = @transform_5, window_bounds = array<i64: 8, 784>}]} {
    %c0 = arith.constant 0 : index
    %c0_0 = arith.constant 0 : index
    %0 = vector.load %arg1[%c0, %c0_0] : memref<8x20xf32, #tpu.memory_space<vmem>>, vector<8x20xf32>
    %1 = arith.truncf %0 : vector<8x20xf32> to vector<8x20xbf16>
    %c0_1 = arith.constant 0 : index
    %c0_2 = arith.constant 0 : index
    %2 = vector.load %arg2[%c0_1, %c0_2] : memref<20x512xbf16, #tpu.memory_space<vmem>>, vector<20x512xbf16>
    %cst = arith.constant dense<0.000000e+00> : vector<8x512xf32>
    %3 = tpu.matmul %1, %2, %cst {dimension_numbers = #tpu.dot_dimension_numbers<[1], [0], [0], [1], [0, 0, 1, 1], [], []>} : vector<8x20xbf16>, vector<20x512xbf16>, vector<8x512xf32> -> vector<8x512xf32>
    %c0_3 = arith.constant 0 : index
    %c0_4 = arith.constant 0 : index
    %4 = vector.load %arg3[%c0_3, %c0_4] : memref<1x512xf32, #tpu.memory_space<vmem>>, vector<1x512xf32>
    %5 = vector.broadcast %4 : vector<1x512xf32> to vector<8x512xf32>
    %6 = arith.addf %3, %5 : vector<8x512xf32>
    %7 = math.tanh %6 : vector<8x512xf32>
    %8 = arith.truncf %7 : vector<8x512xf32> to vector<8x512xbf16>
    %c0_5 = arith.constant 0 : index
    %c0_6 = arith.constant 0 : index
    %9 = vector.load %arg4[%c0_5, %c0_6] : memref<512x896xbf16, #tpu.memory_space<vmem>>, vector<512x896xbf16>
    %cst_7 = arith.constant dense<0.000000e+00> : vector<8x896xf32>
    %10 = tpu.matmul %8, %9, %cst_7 {dimension_numbers = #tpu.dot_dimension_numbers<[1], [0], [0], [1], [0, 0, 1, 1], [], []>} : vector<8x512xbf16>, vector<512x896xbf16>, vector<8x896xf32> -> vector<8x896xf32>
    %c0_8 = arith.constant 0 : index
    %c0_9 = arith.constant 0 : index
    %11 = vector.load %arg5[%c0_8, %c0_9] : memref<1x896xf32, #tpu.memory_space<vmem>>, vector<1x896xf32>
    %12 = vector.broadcast %11 : vector<1x896xf32> to vector<8x896xf32>
    %13 = arith.addf %10, %12 : vector<8x896xf32>
    %14 = vector.extract_strided_slice %13 {offsets = [0, 0], sizes = [8, 784], strides = [1, 1]} : vector<8x896xf32> to vector<8x784xf32>
    %cst_10 = arith.constant 5.000000e-01 : f32
    %15 = vector.broadcast %cst_10 : f32 to vector<8x784xf32>
    %16 = arith.mulf %15, %14 : vector<8x784xf32>
    %17 = math.tanh %16 : vector<8x784xf32>
    %cst_11 = arith.constant 5.000000e-01 : f32
    %18 = vector.broadcast %cst_11 : f32 to vector<8x784xf32>
    %19 = arith.mulf %18, %17 : vector<8x784xf32>
    %cst_12 = arith.constant 5.000000e-01 : f32
    %20 = vector.broadcast %cst_12 : f32 to vector<8x784xf32>
    %21 = arith.addf %19, %20 : vector<8x784xf32>
    %c0_13 = arith.constant 0 : index
    %c0_14 = arith.constant 0 : index
    %22 = vector.load %arg6[%c0_13, %c0_14] : memref<8x784xf32, #tpu.memory_space<vmem>>, vector<8x784xf32>
    tpu.vector_store %arg6[%c0_13, %c0_14], %21 {strides = array<i32>} : memref<8x784xf32, #tpu.memory_space<vmem>>, vector<8x784xf32>,
    return
  }
  func.func @transform_0(%arg0: i32) -> (i32, i32) {
    %c0_i32 = arith.constant 0 : i32
    %c0_i32_0 = arith.constant 0 : i32
    return %arg0, %c0_i32 : i32, i32
  }
  func.func @transform_1(%arg0: i32) -> (i32, i32) {
    %c0_i32 = arith.constant 0 : i32
    %c0_i32_0 = arith.constant 0 : i32
    %c0_i32_1 = arith.constant 0 : i32
    return %c0_i32, %c0_i32_0 : i32, i32
  }
  func.func @transform_2(%arg0: i32) -> (i32, i32) {
    %c0_i32 = arith.constant 0 : i32
    %c0_i32_0 = arith.constant 0 : i32
    %c0_i32_1 = arith.constant 0 : i32
    return %c0_i32, %c0_i32_0 : i32, i32
  }
  func.func @transform_3(%arg0: i32) -> (i32, i32) {
    %c0_i32 = arith.constant 0 : i32
    %c0_i32_0 = arith.constant 0 : i32
    %c0_i32_1 = arith.constant 0 : i32
    return %c0_i32, %c0_i32_0 : i32, i32
  }
  func.func @transform_4(%arg0: i32) -> (i32, i32) {
    %c0_i32 = arith.constant 0 : i32
    %c0_i32_0 = arith.constant 0 : i32
    %c0_i32_1 = arith.constant 0 : i32
    return %c0_i32, %c0_i32_0 : i32, i32
  }
  func.func @transform_5(%arg0: i32) -> (i32, i32) {
    %c0_i32 = arith.constant 0 : i32
    %c0_i32_0 = arith.constant 0 : i32
    return %arg0, %c0_i32 : i32, i32
  }
}

</mosaic_0001>

<bundles_post_ra>
// kernel: tpu_custom_call.1
= control target key start
LH: loop header
LB: loop body
LE: loop exit
PB: predicated region body
PF: predicated region fallthrough
CT: control target
= control target key end

     0   :  { %10 = vsyncpa [#allocation3], 0  ;;  %s2970_s0 = inlined_call_operand.hbm [shape: f32[8,20], index: 0, kind: input, shape index: {}]   ;;  %s2971_s1 = inlined_call_operand.hbm [shape: bf16[20,512], index: 1, kind: input, shape index: {}]   ;;  %s2972_s2 = inlined_call_operand.vmem [shape: f32[1,512], index: 2, kind: input, shape index: {}]   ;;  %s2973_s3 = inlined_call_operand.hbm [shape: bf16[512,896], index: 3, kind: input, shape index: {}]   ;;  %s2974_s4 = inlined_call_operand.vmem [shape: f32[1,896], index: 4, kind: input, shape index: {}]   ;;  %s2975_s5 = inlined_call_operand.hbm [shape: f32[8,784], index: 5, kind: output, shape index: {}]  }
   0x1   :  { %11 = vsyncpa [#allocation6], 0 }
   0x2   :  { %12 = vsyncpa [#allocation4], 0  ;;  %s2804_s18 = smov [#allocation5]   ;;  %s2710_s22 = scalar_lea.hbm %s2971_s1, 768 }
   0x3   :  { %s28_s19 = sshll.u32 %s2804_s18, 4  ;;  %p2711_p0 = scmp.ne.s32.totalorder %s2971_s1, %s2710_s22  ;;  %s29_s19 = int_to_ptr.vmem [resolvable:$true] %s28_s19 }
   0x4   :  { %p2714_p1 = scmp.lt.u32.totalorder %s2710_s22, %s2971_s1 }
   0x6   :  { %p2716_p2 = pnand %p2714_p1, %p2711_p0 }
   0x8   :  { %2719 = shalt.err (!%p2716_p2)
}
   0x9   :  { %s2720_s27 = scalar_lea.vmem %s29_s19, 768  ;;  %p2725_p4 = scmp.lt.s32.totalorder %s29_s19, %s29_s19 }
   0xa   :  { %p2721_p3 = scmp.ne.s32.totalorder %s29_s19, %s2720_s27  ;;  %p2726_p5 = scmp.lt.s32.totalorder %s2720_s27, %s2720_s27 }
   0xc   :  { %p2727_p6 = por %p2726_p5, %p2725_p4 }
   0xe   :  { %p2728_p7 = pnand %p2727_p6, %p2721_p3 }
  0x10   :  { %2731 = shalt.err (!%p2728_p7)
}
  0x11   :  { %s2805_s28 = smov 256   ;;  %s2806_s29 = smov 16  }
  0x12   :  { %34 = dma.hbm_to_vmem [thread:$0]  %s2971_s1, 768, %s29_s19, [#allocation6], %s2805_s28, %s2805_s28, %s2806_s29  }
  0x13   :  { %s2807_s7 = smov [#allocation2]   ;;  %s2808_s9 = smov [#allocation7]  }
  0x14   :  { %s19_s8 = sshll.u32 %s2807_s7, 4  ;;  %s42_s10 = sshll.u32 %s2808_s9, 4  ;;  %s20_s8 = int_to_ptr.vmem [resolvable:$true] %s19_s8  ;;  %s43_s10 = int_to_ptr.vmem [resolvable:$true] %s42_s10 }
  0x15   :  { %s2732_s13 = scalar_lea.hbm %s2970_s0, 128 }
  0x16   :  { %p2733_p8 = scmp.ne.s32.totalorder %s2970_s0, %s2732_s13  ;;  %p2736_p9 = scmp.lt.u32.totalorder %s2732_s13, %s2970_s0 }
  0x18   :  { %p2738_p10 = pnand %p2736_p9, %p2733_p8 }
  0x1a   :  { %2741 = shalt.err (!%p2738_p10)
}
  0x1b   :  { %s2742_s1 = scalar_lea.vmem %s20_s8, 128  ;;  %p2747_p12 = scmp.lt.s32.totalorder %s20_s8, %s20_s8 }
  0x1c   :  { %p2743_p11 = scmp.ne.s32.totalorder %s20_s8, %s2742_s1  ;;  %p2748_p13 = scmp.lt.s32.totalorder %s2742_s1, %s2742_s1 }
  0x1e   :  { %p2749_p0 = por %p2748_p13, %p2747_p12 }
  0x20   :  { %p2750_p1 = pnand %p2749_p0, %p2743_p11 }
  0x22   :  { %2753 = shalt.err (!%p2750_p1)
}
  0x23   :  { %22 = dma.hbm_to_vmem [thread:$0]  %s2970_s0, 128, %s20_s8, [#allocation3]  }
  0x24   :  { %s2754_s22 = scalar_lea.hbm %s2973_s3, 28672 }
  0x25   :  { %p2755_p2 = scmp.ne.s32.totalorder %s2973_s3, %s2754_s22  ;;  %p2758_p3 = scmp.lt.u32.totalorder %s2754_s22, %s2973_s3 }
  0x27   :  { %p2760_p4 = pnand %p2758_p3, %p2755_p2 }
  0x29   :  { %2763 = shalt.err (!%p2760_p4)
}
  0x2a   :  { %s2764_s27 = scalar_lea.vmem %s43_s10, 28672  ;;  %p2769_p6 = scmp.lt.s32.totalorder %s43_s10, %s43_s10 }
  0x2b   :  { %p2765_p5 = scmp.ne.s32.totalorder %s43_s10, %s2764_s27  ;;  %p2770_p7 = scmp.lt.s32.totalorder %s2764_s27, %s2764_s27 }
  0x2d   :  { %p2771_p8 = por %p2770_p7, %p2769_p6 }
  0x2f   :  { %p2772_p9 = pnand %p2771_p8, %p2765_p5 }
  0x31   :  { %2775 = shalt.err (!%p2772_p9)
}
  0x32   :  { %s2809_s0 = smov 448   ;;  %s2810_s28 = smov 28  }
  0x33   :  { %48 = dma.hbm_to_vmem [thread:$0]  %s2973_s3, 28672, %s43_s10, [#allocation6], %s2809_s0, %s2809_s0, %s2810_s28  }
  0x34   :  { %2798 = dma.done.wait [#allocation3], 128  }
  0x35   :  { %2799 = vsyncadd [#allocation3], 4294967168 }
  0x36   :  { %2800 = dma.done.wait [#allocation6], 29440  }
  0x37   :  { %2801 = vsyncadd [#allocation6], 4294937856  ;;  %v2811_v0 = vmov 0   ;;  %v2358_v1 = vld [vmem:[#allocation5 + $0x4] ss:$16 sps:$4 sm:$0xff]   ;;  %vm125_vm0 = vcmask 1041408  }
  0x38   :  { %170 = vmatprep.mubr.bf16.mxu1 %v2811_v0  ;;  %v2360_v2 = vld [vmem:[#allocation5] ss:$16 sps:$4 sm:$0xff]   ;;  %138 = vmatprep.subr.bf16.mxu1 %v2358_v1  ;;  %v61_v6 = vld [vmem:[#allocation2] sm:$0xff]  ;;  %v68_v11 = vld [vmem:[#allocation5 + $0x28] sm:$0x33]  ;;  %vm121_vm1 = vcmask 162816  }
  0x39   :  { %v67_v3 = vld [vmem:[#allocation5 + $0x20] sm:$0x33]  ;;  %139 = vmatpush1.bf16.msra.mxu1 %v2360_v2  ;;  %v2365_v7 = vld [vmem:[#allocation5 + $0xc] ss:$16 sps:$4 sm:$0xff]   ;;  %v2368_v9 = vld [vmem:[#allocation7 + $0x4] ss:$28 sps:$4 sm:$0xff]   ;;  %v62_v12 = vpack.c.bf16 %v61_v6, %v61_v6  ;;  %v2058_v15 = vcombine.high %v68_v11, %v68_v11  ;;  %v2057_v16 = vcombine.low %v68_v11, %v68_v11 }
  0x3a   :  { %v2056_v4 = vcombine.high %v67_v3, %v67_v3  ;;  %v2055_v5 = vcombine.low %v67_v3, %v67_v3  ;;  %v2363_v10 = vld [vmem:[#allocation5 + $0x8] ss:$16 sps:$4 sm:$0xff]   ;;  %1673 = vmatprep.subr.bf16.mxu0 %v2368_v9  ;;  %v2373_v13 = vld [vmem:[#allocation7] ss:$28 sps:$4 sm:$0xff]   ;;  %v2380_v18 = vld [vmem:[#allocation7 + $0x74] ss:$28 sps:$4 sm:$0xff]  }
  0x3b   :  { %v2374_v14 = vld [vmem:[#allocation7 + $0x3c] ss:$28 sps:$4 sm:$0xff]   ;;  %1674 = vmatpush1.bf16.msra.mxu0 %v2373_v13  ;;  %v2372_v19 = vld [vmem:[#allocation7 + $0xc] ss:$28 sps:$4 sm:$0xff]   ;;  %v133_v20 = vsel %vm125_vm0, %v2057_v16, 0  ;;  %vm2033_vm2 = vcmask 130048  }
  0x3c   :  { %2059 = vmatprep.subr.msk.bf16.mxu1 %vm125_vm0, %v2056_v4  ;;  %v127_v8 = vsel %vm125_vm0, %v2055_v5, 0  ;;  %v2379_v17 = vld [vmem:[#allocation7 + $0x38] ss:$28 sps:$4 sm:$0xff]   ;;  %1675 = vmatprep.subr.bf16.mxu0 %v2374_v14  ;;  %v2385_v21 = vld [vmem:[#allocation7 + $0x70] ss:$28 sps:$4 sm:$0xff]  }
  0x3d   :  { %141 = vmatpush1.bf16.msra.mxu1 %v127_v8  ;;  %v2386_v22 = vld [vmem:[#allocation7 + $0xac] ss:$28 sps:$4 sm:$0xff]   ;;  %v2378_v24 = vld [vmem:[#allocation7 + $0x44] ss:$28 sps:$4 sm:$0xff]   ;;  %v2384_v28 = vld [vmem:[#allocation7 + $0x7c] ss:$28 sps:$4 sm:$0xff]  }
  0x3e   :  { %179 = vmatprep.subr.bf16.mxu1 %v2365_v7  ;;  %v2370_v23 = vld [vmem:[#allocation7 + $0x8] ss:$28 sps:$4 sm:$0xff]   ;;  %v2376_v27 = vld [vmem:[#allocation7 + $0x40] ss:$28 sps:$4 sm:$0xff]   ;;  %v2382_v31 = vld [vmem:[#allocation7 + $0x78] ss:$28 sps:$4 sm:$0xff]  }
  0x3f   :  { %1676 = vmatpush1.bf16.msra.mxu0 %v2379_v17  ;;  %v2391_v25 = vld [vmem:[#allocation7 + $0xa8] ss:$28 sps:$4 sm:$0xff]   ;;  %v2397_v29 = vld [vmem:[#allocation7 + $0xe0] ss:$28 sps:$4 sm:$0xff]   ;;  %v2390_v32 = vld [vmem:[#allocation7 + $0xb4] ss:$28 sps:$4 sm:$0xff]   ;;  %v71_v17 = vlaneseq }
  0x40   :  { %2060 = vmatmul.mubr.msk.bf16.vlgmr.msra.gmra.mrb[0].mxu1 %vm121_vm1, %v62_v12  ;;  %1677 = vmatprep.subr.bf16.mxu0 %v2380_v18  ;;  %v2392_v26 = vld [vmem:[#allocation7 + $0xe4] ss:$28 sps:$4 sm:$0xff]   ;;  %v2398_v30 = vld [vmem:[#allocation7 + $0x11c] ss:$28 sps:$4 sm:$0xff]   ;;  %v2404_v34 = vld [vmem:[#allocation7 + $0x154] ss:$28 sps:$4 sm:$0xff]  }
  0x41   :  { %180 = vmatpush1.bf16.msra.mxu1 %v2363_v10  ;;  %211 = vmatprep.mubr.bf16.mxu1 %v2811_v0  ;;  %v2403_v33 = vld [vmem:[#allocation7 + $0x118] ss:$28 sps:$4 sm:$0xff]   ;;  %v2388_v35 = vld [vmem:[#allocation7 + $0xb0] ss:$28 sps:$4 sm:$0xff]   ;;  %v2394_v39 = vld [vmem:[#allocation7 + $0xe8] ss:$28 sps:$4 sm:$0xff]  }
  0x42   :  { %2061 = vmatprep.subr.msk.bf16.mxu1 %vm125_vm0, %v2058_v15  ;;  %v2396_v36 = vld [vmem:[#allocation7 + $0xec] ss:$28 sps:$4 sm:$0xff]   ;;  %v2402_v40 = vld [vmem:[#allocation7 + $0x124] ss:$28 sps:$4 sm:$0xff]   ;;  %v2408_v44 = vld [vmem:[#allocation7 + $0x15c] ss:$28 sps:$4 sm:$0xff]  }
  0x43   :  { %1678 = vmatpush1.bf16.msra.mxu0 %v2385_v21  ;;  %v2409_v37 = vld [vmem:[#allocation7 + $0x150] ss:$28 sps:$4 sm:$0xff]   ;;  %v2415_v41 = vld [vmem:[#allocation7 + $0x188] ss:$28 sps:$4 sm:$0xff]   ;;  %v2400_v43 = vld [vmem:[#allocation7 + $0x120] ss:$28 sps:$4 sm:$0xff]  }
  0x44   :  { %1679 = vmatprep.subr.bf16.mxu0 %v2386_v22  ;;  %v2410_v38 = vld [vmem:[#allocation7 + $0x18c] ss:$28 sps:$4 sm:$0xff]   ;;  %v2416_v42 = vld [vmem:[#allocation7 + $0x1c4] ss:$28 sps:$4 sm:$0xff]   ;;  %v2422_v46 = vld [vmem:[#allocation7 + $0x1fc] ss:$28 sps:$4 sm:$0xff]  }
  0x45   :  { %182 = vmatpush1.bf16.msra.mxu1 %v133_v20  ;;  %v2421_v45 = vld [vmem:[#allocation7 + $0x1c0] ss:$28 sps:$4 sm:$0xff]   ;;  %v2406_v47 = vld [vmem:[#allocation7 + $0x158] ss:$28 sps:$4 sm:$0xff]   ;;  %v2412_v51 = vld [vmem:[#allocation7 + $0x190] ss:$28 sps:$4 sm:$0xff]  }
  0x46   :  { %1755 = vmatprep.subr.bf16.mxu1 %v2372_v19  ;;  %v2414_v48 = vld [vmem:[#allocation7 + $0x194] ss:$28 sps:$4 sm:$0xff]   ;;  %v2420_v52 = vld [vmem:[#allocation7 + $0x1cc] ss:$28 sps:$4 sm:$0xff]   ;;  %v2426_v56 = vld [vmem:[#allocation7 + $0x204] ss:$28 sps:$4 sm:$0xff]  }
  0x47   :  { %1680 = vmatpush1.bf16.msra.mxu0 %v2391_v25  ;;  %v2427_v49 = vld [vmem:[#allocation7 + $0x1f8] ss:$28 sps:$4 sm:$0xff]   ;;  %v2433_v53 = vld [vmem:[#allocation7 + $0x230] ss:$28 sps:$4 sm:$0xff]   ;;  %v2418_v55 = vld [vmem:[#allocation7 + $0x1c8] ss:$28 sps:$4 sm:$0xff]  }
  0x48   :  { %2062 = vmatmul.mubr.msk.bf16.vlgmr.msra.gmra.mrb[4].mxu1 %vm121_vm1, %v62_v12  ;;  %1681 = vmatprep.subr.bf16.mxu0 %v2392_v26  ;;  %v2428_v50 = vld [vmem:[#allocation7 + $0x234] ss:$28 sps:$4 sm:$0xff]   ;;  %v2434_v54 = vld [vmem:[#allocation7 + $0x26c] ss:$28 sps:$4 sm:$0xff]   ;;  %v2424_v58 = vld [vmem:[#allocation7 + $0x200] ss:$28 sps:$4 sm:$0xff]  }
  0x49   :  { %1756 = vmatpush1.bf16.msra.mxu1 %v2370_v23  ;;  %v2439_v57 = vld [vmem:[#allocation7 + $0x268] ss:$28 sps:$4 sm:$0xff]   ;;  %v2432_v59 = vld [vmem:[#allocation7 + $0x23c] ss:$28 sps:$4 sm:$0xff]   ;;  %v2438_v61 = vld [vmem:[#allocation7 + $0x274] ss:$28 sps:$4 sm:$0xff]  }
  0x4a   :  { %1757 = vmatprep.subr.bf16.mxu1 %v2378_v24  ;;  %v2430_v60 = vld [vmem:[#allocation7 + $0x238] ss:$28 sps:$4 sm:$0xff]   ;;  %v2436_v62 = vld [vmem:[#allocation7 + $0x270] ss:$28 sps:$4 sm:$0xff]   ;;  %v2440_v63 = vld [vmem:[#allocation7 + $0x2a4] ss:$28 sps:$4 sm:$0xff]  }
  0x4b   :  { %1682 = vmatpush1.bf16.msra.mxu0 %v2397_v29  ;;  %v2444_v0 = vld [vmem:[#allocation7 + $0x2ac] ss:$28 sps:$4 sm:$0xff]   ;;  %v2445_v2 = vld [vmem:[#allocation7 + $0x2a0] ss:$28 sps:$4 sm:$0xff]   ;;  %v2451_v6 = vld [vmem:[#allocation7 + $0x2d8] ss:$28 sps:$4 sm:$0xff]  }
  0x4c   :  { %1683 = vmatprep.subr.bf16.mxu0 %v2398_v30  ;;  %v2442_v1 = vld [vmem:[#allocation7 + $0x2a8] ss:$28 sps:$4 sm:$0xff]   ;;  %v2446_v3 = vld [vmem:[#allocation7 + $0x2dc] ss:$28 sps:$4 sm:$0xff]   ;;  %v2452_v7 = vld [vmem:[#allocation7 + $0x314] ss:$28 sps:$4 sm:$0xff]  }
  0x4d   :  { %1758 = vmatpush1.bf16.msra.mxu1 %v2376_v27  ;;  %v2450_v4 = vld [vmem:[#allocation7 + $0x2e4] ss:$28 sps:$4 sm:$0xff]   ;;  %v2456_v8 = vld [vmem:[#allocation7 + $0x31c] ss:$28 sps:$4 sm:$0xff]   ;;  %v2457_v10 = vld [vmem:[#allocation7 + $0x310] ss:$28 sps:$4 sm:$0xff]  }
  0x4e   :  { %1759 = vmatprep.subr.bf16.mxu1 %v2384_v28  ;;  %v2448_v5 = vld [vmem:[#allocation7 + $0x2e0] ss:$28 sps:$4 sm:$0xff]   ;;  %v2454_v9 = vld [vmem:[#allocation7 + $0x318] ss:$28 sps:$4 sm:$0xff]   ;;  %v2458_v11 = vld [vmem:[#allocation7 + $0x34c] ss:$28 sps:$4 sm:$0xff]  }
  0x4f   :  { %1684 = vmatpush1.bf16.msra.mxu0 %v2403_v33  ;;  %v2462_v12 = vld [vmem:[#allocation7 + $0x354] ss:$28 sps:$4 sm:$0xff]   ;;  %v2463_v14 = vld [vmem:[#allocation7 + $0x348] ss:$28 sps:$4 sm:$0xff]   ;;  %v2885_v18 = vshrl.u32 %v71_v17, 7 }
  0x50   :  { %1685 = vmatprep.subr.bf16.mxu0 %v2404_v34  ;;  %v2460_v13 = vld [vmem:[#allocation7 + $0x350] ss:$28 sps:$4 sm:$0xff]   ;;  %v2466_v15 = vld [vmem:[#allocation7 + $0x384] ss:$28 sps:$4 sm:$0xff]   ;;  %v2891_v20 = vld [vmem:[%s2972_s2] sm:$0xf] }
  0x51   :  { %1760 = vmatpush1.bf16.msra.mxu1 %v2382_v31  ;;  %v2469_v16 = vld [vmem:[#allocation7 + $0x38c] ss:$28 sps:$4 sm:$0xff]   ;;  %v73_v19 = vsub.s32 0, %v2885_v18  ;;  %v77_v21 = vsub.s32 1, %v2885_v18  ;;  %v85_v29 = vsub.s32 3, %v2885_v18 }
  0x52   :  { %1761 = vmatprep.subr.bf16.mxu1 %v2390_v32  ;;  %v2526_v17 = vld [vmem:[#allocation7 + $0x5b4] ss:$28 sps:$4 sm:$0xff]  }
  0x53   :  { %1686 = vmatpush1.bf16.msra.mxu0 %v2409_v37  ;;  %v74_v22 = vrot.slane %v2891_v20, %v73_v19  ;;  %v78_v23 = vrot.slane %v2891_v20, %v77_v21  ;;  %v86_v31 = vrot.slane %v2891_v20, %v85_v29 }
  0x54   :  { %1687 = vmatprep.subr.bf16.mxu0 %v2410_v38 }
  0x55   :  { %1762 = vmatpush1.bf16.msra.mxu1 %v2388_v35 }
  0x56   :  { %1763 = vmatprep.subr.bf16.mxu1 %v2396_v36 }
  0x57   :  { %1688 = vmatpush1.bf16.msra.mxu0 %v2415_v41  ;;  %v2467_v41 = vld [vmem:[#allocation7 + $0x388] ss:$28 sps:$4 sm:$0xff]  }
  0x58   :  { %1689 = vmatprep.subr.bf16.mxu0 %v2416_v42 }
  0x59   :  { %1764 = vmatpush1.bf16.msra.mxu1 %v2394_v39 }
  0x5a   :  { %1765 = vmatprep.subr.bf16.mxu1 %v2402_v40  ;;  %v2464_v40 = vld [vmem:[#allocation7 + $0x380] ss:$28 sps:$4 sm:$0xff]  }
  0x5b   :  { %1690 = vmatpush1.bf16.msra.mxu0 %v2421_v45  ;;  %v2470_v45 = vld [vmem:[#allocation7 + $0x3b8] ss:$28 sps:$4 sm:$0xff]  }
  0x5c   :  { %1691 = vmatprep.subr.bf16.mxu0 %v2422_v46  ;;  %v2473_v46 = vld [vmem:[#allocation7 + $0x3c0] ss:$28 sps:$4 sm:$0xff]  }
  0x5d   :  { %1766 = vmatpush1.bf16.msra.mxu1 %v2400_v43  ;;  %v2472_v43 = vld [vmem:[#allocation7 + $0x3bc] ss:$28 sps:$4 sm:$0xff]  }
  0x5e   :  { %1767 = vmatprep.subr.bf16.mxu1 %v2408_v44  ;;  %v2475_v44 = vld [vmem:[#allocation7 + $0x3c4] ss:$28 sps:$4 sm:$0xff]  }
  0x5f   :  { %1692 = vmatpush1.bf16.msra.mxu0 %v2427_v49 }
  0x60   :  { %1693 = vmatprep.subr.bf16.mxu0 %v2428_v50  ;;  %v2476_v50 = vld [vmem:[#allocation7 + $0x3f0] ss:$28 sps:$4 sm:$0xff]  }
  0x61   :  { %1768 = vmatpush1.bf16.msra.mxu1 %v2406_v47  ;;  %v2478_v47 = vld [vmem:[#allocation7 + $0x3f4] ss:$28 sps:$4 sm:$0xff]  }
  0x62   :  { %1769 = vmatprep.subr.bf16.mxu1 %v2414_v48  ;;  %v2481_v48 = vld [vmem:[#allocation7 + $0x3fc] ss:$28 sps:$4 sm:$0xff]  }
  0x63   :  { %1694 = vmatpush1.bf16.msra.mxu0 %v2433_v53  ;;  %v2484_v53 = vld [vmem:[#allocation7 + $0x42c] ss:$28 sps:$4 sm:$0xff]  }
  0x64   :  { %1695 = vmatprep.subr.bf16.mxu0 %v2434_v54  ;;  %v2487_v54 = vld [vmem:[#allocation7 + $0x434] ss:$28 sps:$4 sm:$0xff]  }
  0x65   :  { %1770 = vmatpush1.bf16.msra.mxu1 %v2412_v51  ;;  %v2479_v51 = vld [vmem:[#allocation7 + $0x3f8] ss:$28 sps:$4 sm:$0xff]  }
  0x66   :  { %1771 = vmatprep.subr.bf16.mxu1 %v2420_v52 }
  0x67   :  { %1696 = vmatpush1.bf16.msra.mxu0 %v2439_v57  ;;  %v2490_v57 = vld [vmem:[#allocation7 + $0x464] ss:$28 sps:$4 sm:$0xff]  }
  0x68   :  { %1697 = vmatprep.subr.bf16.mxu0 %v2440_v63  ;;  %v2494_v63 = vld [vmem:[#allocation7 + $0x498] ss:$28 sps:$4 sm:$0xff]  }
  0x69   :  { %1772 = vmatpush1.bf16.msra.mxu1 %v2418_v55  ;;  %v2482_v55 = vld [vmem:[#allocation7 + $0x428] ss:$28 sps:$4 sm:$0xff]  }
  0x6a   :  { %1773 = vmatprep.subr.bf16.mxu1 %v2426_v56  ;;  %v2485_v56 = vld [vmem:[#allocation7 + $0x430] ss:$28 sps:$4 sm:$0xff]  }
  0x6b   :  { %1698 = vmatpush1.bf16.msra.mxu0 %v2445_v2  ;;  %v2505_v2 = vld [vmem:[#allocation7 + $0x4dc] ss:$28 sps:$4 sm:$0xff]  }
  0x6c   :  { %1699 = vmatprep.subr.bf16.mxu0 %v2446_v3  ;;  %v2500_v3 = vld [vmem:[#allocation7 + $0x4d0] ss:$28 sps:$4 sm:$0xff]  }
  0x6d   :  { %1774 = vmatpush1.bf16.msra.mxu1 %v2424_v58  ;;  %v2493_v58 = vld [vmem:[#allocation7 + $0x46c] ss:$28 sps:$4 sm:$0xff]  }
  0x6e   :  { %1775 = vmatprep.subr.bf16.mxu1 %v2432_v59  ;;  %v2488_v59 = vld [vmem:[#allocation7 + $0x460] ss:$28 sps:$4 sm:$0xff]  }
  0x6f   :  { %1700 = vmatpush1.bf16.msra.mxu0 %v2451_v6  ;;  %v2511_v6 = vld [vmem:[#allocation7 + $0x514] ss:$28 sps:$4 sm:$0xff]  }
  0x70   :  { %1701 = vmatprep.subr.bf16.mxu0 %v2452_v7  ;;  %v2506_v7 = vld [vmem:[#allocation7 + $0x508] ss:$28 sps:$4 sm:$0xff]  }
  0x71   :  { %1776 = vmatpush1.bf16.msra.mxu1 %v2430_v60  ;;  %v2491_v60 = vld [vmem:[#allocation7 + $0x468] ss:$28 sps:$4 sm:$0xff]  }
  0x72   :  { %1777 = vmatprep.subr.bf16.mxu1 %v2438_v61  ;;  %v2496_v61 = vld [vmem:[#allocation7 + $0x49c] ss:$28 sps:$4 sm:$0xff]  }
  0x73   :  { %1702 = vmatpush1.bf16.msra.mxu0 %v2457_v10  ;;  %v2517_v10 = vld [vmem:[#allocation7 + $0x54c] ss:$28 sps:$4 sm:$0xff]  }
  0x74   :  { %1703 = vmatprep.subr.bf16.mxu0 %v2458_v11  ;;  %v2512_v11 = vld [vmem:[#allocation7 + $0x540] ss:$28 sps:$4 sm:$0xff]  }
  0x75   :  { %1778 = vmatpush1.bf16.msra.mxu1 %v2436_v62  ;;  %v2499_v62 = vld [vmem:[#allocation7 + $0x4a4] ss:$28 sps:$4 sm:$0xff]  }
  0x76   :  { %1779 = vmatprep.subr.bf16.mxu1 %v2444_v0  ;;  %v2497_v0 = vld [vmem:[#allocation7 + $0x4a0] ss:$28 sps:$4 sm:$0xff]  }
  0x77   :  { %1704 = vmatpush1.bf16.msra.mxu0 %v2463_v14  ;;  %v2523_v14 = vld [vmem:[#allocation7 + $0x584] ss:$28 sps:$4 sm:$0xff]  }
  0x78   :  { %1714 = vmatprep.subr.bf16.mxu0 %v2466_v15  ;;  %v2518_v15 = vld [vmem:[#allocation7 + $0x578] ss:$28 sps:$4 sm:$0xff]  }
  0x79   :  { %1780 = vmatpush1.bf16.msra.mxu1 %v2442_v1  ;;  %v2502_v1 = vld [vmem:[#allocation7 + $0x4d4] ss:$28 sps:$4 sm:$0xff]  }
  0x7a   :  { %1781 = vmatprep.subr.bf16.mxu1 %v2450_v4  ;;  %v2503_v4 = vld [vmem:[#allocation7 + $0x4d8] ss:$28 sps:$4 sm:$0xff]  }
  0x7d   :  { %1782 = vmatpush1.bf16.msra.mxu1 %v2448_v5  ;;  %v2508_v5 = vld [vmem:[#allocation7 + $0x50c] ss:$28 sps:$4 sm:$0xff]  }
  0x7e   :  { %1783 = vmatprep.subr.bf16.mxu1 %v2456_v8  ;;  %v2509_v8 = vld [vmem:[#allocation7 + $0x510] ss:$28 sps:$4 sm:$0xff]  }
  0x81   :  { %1784 = vmatpush1.bf16.msra.mxu1 %v2454_v9  ;;  %v2514_v9 = vld [vmem:[#allocation7 + $0x544] ss:$28 sps:$4 sm:$0xff]  }
  0x82   :  { %1785 = vmatprep.subr.bf16.mxu1 %v2462_v12  ;;  %v2515_v12 = vld [vmem:[#allocation7 + $0x548] ss:$28 sps:$4 sm:$0xff]  }
  0x85   :  { %1786 = vmatpush1.bf16.msra.mxu1 %v2460_v13  ;;  %v2520_v13 = vld [vmem:[#allocation7 + $0x57c] ss:$28 sps:$4 sm:$0xff]  }
  0x86   :  { %1796 = vmatprep.subr.bf16.mxu1 %v2469_v16  ;;  %v2521_v16 = vld [vmem:[#allocation7 + $0x580] ss:$28 sps:$4 sm:$0xff]  }
 0x113   :  { %v172_v24 = vpop.f32.mrb[0].mxu1 }
 0x114   :  { %v173_v25 = vadd.f32 %v172_v24, %v74_v22  ;;  %v174_v26 = vpop.f32.mrb[1].mxu1  ;;  %v2529_v22 = vld [vmem:[#allocation7 + $0x5bc] ss:$28 sps:$4 sm:$0xff]   ;;  %v2524_v24 = vld [vmem:[#allocation7 + $0x5b0] ss:$28 sps:$4 sm:$0xff]  }
 0x115   :  { %v175_v27 = vadd.f32 %v174_v26, %v78_v23  ;;  %v176_v28 = vpop.f32.mrb[2].mxu1  ;;  %v81_v23 = vsub.s32 2, %v2885_v18  ;;  %v2532_v26 = vld [vmem:[#allocation7 + $0x5ec] ss:$28 sps:$4 sm:$0xff]  }
 0x116   :  { %2688 = vtanh.f32 %v173_v25  ;;  %v177_v30 = vpop.f32.mrb[3].mxu1  ;;  %v2527_v25 = vld [vmem:[#allocation7 + $0x5b8] ss:$28 sps:$4 sm:$0xff]  }
 0x117   :  { %2690 = vtanh.f32 %v175_v27  ;;  %v2535_v27 = vld [vmem:[#allocation7 + $0x5f4] ss:$28 sps:$4 sm:$0xff]   ;;  %v82_v28 = vrot.slane %v2891_v20, %v81_v23  ;;  %v2530_v30 = vld [vmem:[#allocation7 + $0x5e8] ss:$28 sps:$4 sm:$0xff]  }
 0x118   :  { %v2542_v20 = vld [vmem:[#allocation7 + $0x658] ss:$28 sps:$4 sm:$0xff]  }
 0x11b   :  { %v2904_v32 = vpop.f32.mrb[4].mxu1 }
 0x11c   :  { %v215_v33 = vpop.f32.mrb[5].mxu1 }
 0x11d   :  { %v216_v34 = vadd.f32 %v215_v33, %v86_v31  ;;  %v217_v35 = vpop.f32.mrb[6].mxu1  ;;  %v2533_v31 = vld [vmem:[#allocation7 + $0x5f0] ss:$28 sps:$4 sm:$0xff]   ;;  %v2538_v33 = vld [vmem:[#allocation7 + $0x624] ss:$28 sps:$4 sm:$0xff]  }
 0x11e   :  { %v218_v36 = vpop.f32.mrb[7].mxu1  ;;  %v214_v35 = vadd.f32 %v2904_v32, %v82_v28  ;;  %v2548_v32 = vld [vmem:[#allocation7 + $0x690] ss:$28 sps:$4 sm:$0xff]   ;;  %v2604_v28 = vld [vmem:[#allocation7 + $0x398] ss:$28 sps:$4 sm:$0xff]  }
 0x11f   :  { %2692 = vtanh.f32 %v216_v34  ;;  %v2541_v34 = vld [vmem:[#allocation7 + $0x62c] ss:$28 sps:$4 sm:$0xff]   ;;  %v2536_v36 = vld [vmem:[#allocation7 + $0x620] ss:$28 sps:$4 sm:$0xff]  }
 0x120   :  { %v2689_v37 = vpop.eup %2688  ;;  %2694 = vtanh.f32 %v214_v35  ;;  %v2612_v35 = vld [vmem:[#allocation7 + $0x244] ss:$28 sps:$4 sm:$0xff]  }
 0x121   :  { %v2691_v38 = vpop.eup %2690  ;;  %v2908_v42 = vpack.c.bf16 %v2689_v37, %v2689_v37  ;;  %v2539_v37 = vld [vmem:[#allocation7 + $0x628] ss:$28 sps:$4 sm:$0xff]  }
 0x122   :  { %v2906_v39 = vpack.c.bf16 %v2691_v38, %v2691_v38  ;;  %v2544_v38 = vld [vmem:[#allocation7 + $0x65c] ss:$28 sps:$4 sm:$0xff]  }
 0x124   :  { %1705 = vmatprep.mubr.bf16.mxu0 %v2906_v39  ;;  %1787 = vmatprep.mubr.bf16.mxu1 %v2906_v39 }
 0x125   :  { %1706 = vmatmul.mubr.bf16.vlgmr.msra.gmra.mrb[0].mxu0 %v2908_v42  ;;  %1788 = vmatmul.mubr.bf16.vlgmr.msra.gmra.mrb[8].mxu1 %v2908_v42 }
 0x126   :  { %1715 = vmatpush1.bf16.msra.mxu0 %v2464_v40  ;;  %1797 = vmatpush1.bf16.msra.mxu1 %v2467_v41  ;;  %v2547_v40 = vld [vmem:[#allocation7 + $0x664] ss:$28 sps:$4 sm:$0xff]  }
 0x127   :  { %1716 = vmatprep.subr.bf16.mxu0 %v2472_v43  ;;  %1798 = vmatprep.subr.bf16.mxu1 %v2475_v44  ;;  %v2545_v41 = vld [vmem:[#allocation7 + $0x660] ss:$28 sps:$4 sm:$0xff]   ;;  %v2550_v43 = vld [vmem:[#allocation7 + $0x694] ss:$28 sps:$4 sm:$0xff]  }
 0x128   :  { %v2553_v44 = vld [vmem:[#allocation7 + $0x69c] ss:$28 sps:$4 sm:$0xff]  }
 0x129   :  { %v2693_v49 = vpop.eup %2692 }
 0x12a   :  { %1717 = vmatpush1.bf16.msra.mxu0 %v2470_v45  ;;  %1799 = vmatpush1.bf16.msra.mxu1 %v2473_v46  ;;  %v2914_v52 = vpack.c.bf16 %v2693_v49, %v2693_v49  ;;  %v2551_v45 = vld [vmem:[#allocation7 + $0x698] ss:$28 sps:$4 sm:$0xff]   ;;  %v2556_v46 = vld [vmem:[#allocation7 + $0x6cc] ss:$28 sps:$4 sm:$0xff]  }
 0x12b   :  { %1718 = vmatprep.subr.bf16.mxu0 %v2478_v47  ;;  %1800 = vmatprep.subr.bf16.mxu1 %v2481_v48  ;;  %v2559_v47 = vld [vmem:[#allocation7 + $0x6d4] ss:$28 sps:$4 sm:$0xff]   ;;  %v2695_v48 = vpop.eup %2694  ;;  %v2554_v49 = vld [vmem:[#allocation7 + $0x6c8] ss:$28 sps:$4 sm:$0xff]  }
 0x12c   :  { %1746 = vmatprep.mubr.bf16.mxu0 %v2914_v52  ;;  %1828 = vmatprep.mubr.bf16.mxu1 %v2914_v52 }
 0x12e   :  { %1719 = vmatpush1.bf16.msra.mxu0 %v2476_v50  ;;  %1801 = vmatpush1.bf16.msra.mxu1 %v2479_v51  ;;  %v2557_v50 = vld [vmem:[#allocation7 + $0x6d0] ss:$28 sps:$4 sm:$0xff]  }
 0x12f   :  { %1720 = vmatprep.subr.bf16.mxu0 %v2484_v53  ;;  %1802 = vmatprep.subr.bf16.mxu1 %v2487_v54  ;;  %v2562_v51 = vld [vmem:[#allocation7 + $0x14] ss:$28 sps:$4 sm:$0xff]   ;;  %v2923_v54 = vpack.c.bf16 %v2695_v48, %v2695_v48 }
 0x130   :  { %v2563_v53 = vld [vmem:[#allocation7 + $0x1d8] ss:$28 sps:$4 sm:$0xff]   ;;  %v2628_v48 = vld [vmem:[#allocation7 + $0x670] ss:$28 sps:$4 sm:$0xff]  }
 0x132   :  { %1721 = vmatpush1.bf16.msra.mxu0 %v2482_v55  ;;  %1803 = vmatpush1.bf16.msra.mxu1 %v2485_v56  ;;  %v2560_v55 = vld [vmem:[#allocation7 + $0x10] ss:$28 sps:$4 sm:$0xff]   ;;  %v2564_v56 = vld [vmem:[#allocation7 + $0x18] ss:$28 sps:$4 sm:$0xff]  }
 0x133   :  { %1722 = vmatprep.subr.bf16.mxu0 %v2490_v57  ;;  %1804 = vmatprep.subr.bf16.mxu1 %v2493_v58  ;;  %v2567_v57 = vld [vmem:[#allocation7 + $0x4c] ss:$28 sps:$4 sm:$0xff]  }
 0x134   :  { %v2568_v58 = vld [vmem:[#allocation7 + $0x210] ss:$28 sps:$4 sm:$0xff]  }
 0x136   :  { %1723 = vmatpush1.bf16.msra.mxu0 %v2488_v59  ;;  %1805 = vmatpush1.bf16.msra.mxu1 %v2491_v60  ;;  %v2565_v59 = vld [vmem:[#allocation7 + $0x48] ss:$28 sps:$4 sm:$0xff]   ;;  %v2569_v60 = vld [vmem:[#allocation7 + $0x50] ss:$28 sps:$4 sm:$0xff]  }
 0x137   :  { %1724 = vmatprep.subr.bf16.mxu0 %v2496_v61  ;;  %1806 = vmatprep.subr.bf16.mxu1 %v2499_v62  ;;  %v2572_v61 = vld [vmem:[#allocation7 + $0x84] ss:$28 sps:$4 sm:$0xff]  }
 0x138   :  { %v2573_v62 = vld [vmem:[#allocation7 + $0x248] ss:$28 sps:$4 sm:$0xff]  }
 0x13a   :  { %1725 = vmatpush1.bf16.msra.mxu0 %v2494_v63  ;;  %1807 = vmatpush1.bf16.msra.mxu1 %v2497_v0  ;;  %v2570_v63 = vld [vmem:[#allocation7 + $0x80] ss:$28 sps:$4 sm:$0xff]   ;;  %v2574_v0 = vld [vmem:[#allocation7 + $0x88] ss:$28 sps:$4 sm:$0xff]  }
 0x13b   :  { %1726 = vmatprep.subr.bf16.mxu0 %v2502_v1  ;;  %1808 = vmatprep.subr.bf16.mxu1 %v2505_v2  ;;  %v2577_v1 = vld [vmem:[#allocation7 + $0xbc] ss:$28 sps:$4 sm:$0xff]  }
 0x13c   :  { %v2578_v2 = vld [vmem:[#allocation7 + $0x280] ss:$28 sps:$4 sm:$0xff]  }
 0x13e   :  { %1727 = vmatpush1.bf16.msra.mxu0 %v2500_v3  ;;  %1809 = vmatpush1.bf16.msra.mxu1 %v2503_v4  ;;  %v2575_v3 = vld [vmem:[#allocation7 + $0xb8] ss:$28 sps:$4 sm:$0xff]   ;;  %v2579_v4 = vld [vmem:[#allocation7 + $0xc0] ss:$28 sps:$4 sm:$0xff]  }
 0x13f   :  { %1728 = vmatprep.subr.bf16.mxu0 %v2508_v5  ;;  %1810 = vmatprep.subr.bf16.mxu1 %v2511_v6  ;;  %v2582_v5 = vld [vmem:[#allocation7 + $0xf4] ss:$28 sps:$4 sm:$0xff]  }
 0x140   :  { %v2580_v6 = vld [vmem:[#allocation7 + $0xf0] ss:$28 sps:$4 sm:$0xff]  }
 0x142   :  { %1729 = vmatpush1.bf16.msra.mxu0 %v2506_v7  ;;  %1811 = vmatpush1.bf16.msra.mxu1 %v2509_v8  ;;  %v2584_v7 = vld [vmem:[#allocation7 + $0xf8] ss:$28 sps:$4 sm:$0xff]   ;;  %v2587_v8 = vld [vmem:[#allocation7 + $0x12c] ss:$28 sps:$4 sm:$0xff]  }
 0x143   :  { %1730 = vmatprep.subr.bf16.mxu0 %v2514_v9  ;;  %1812 = vmatprep.subr.bf16.mxu1 %v2517_v10  ;;  %v2588_v9 = vld [vmem:[#allocation7 + $0x2f0] ss:$28 sps:$4 sm:$0xff]   ;;  %v2585_v10 = vld [vmem:[#allocation7 + $0x128] ss:$28 sps:$4 sm:$0xff]  }
 0x146   :  { %1731 = vmatpush1.bf16.msra.mxu0 %v2512_v11  ;;  %1813 = vmatpush1.bf16.msra.mxu1 %v2515_v12  ;;  %v2589_v11 = vld [vmem:[#allocation7 + $0x130] ss:$28 sps:$4 sm:$0xff]   ;;  %v2592_v12 = vld [vmem:[#allocation7 + $0x164] ss:$28 sps:$4 sm:$0xff]  }
 0x147   :  { %1732 = vmatprep.subr.bf16.mxu0 %v2520_v13  ;;  %1814 = vmatprep.subr.bf16.mxu1 %v2523_v14  ;;  %v2593_v13 = vld [vmem:[#allocation7 + $0x328] ss:$28 sps:$4 sm:$0xff]   ;;  %v2590_v14 = vld [vmem:[#allocation7 + $0x160] ss:$28 sps:$4 sm:$0xff]  }
 0x14a   :  { %1733 = vmatpush1.bf16.msra.mxu0 %v2518_v15  ;;  %1815 = vmatpush1.bf16.msra.mxu1 %v2521_v16  ;;  %v2594_v15 = vld [vmem:[#allocation7 + $0x168] ss:$28 sps:$4 sm:$0xff]   ;;  %v2597_v16 = vld [vmem:[#allocation7 + $0x19c] ss:$28 sps:$4 sm:$0xff]  }
 0x14b   :  { %1734 = vmatprep.subr.bf16.mxu0 %v2526_v17  ;;  %1816 = vmatprep.subr.bf16.mxu1 %v2529_v22  ;;  %v2598_v17 = vld [vmem:[#allocation7 + $0x360] ss:$28 sps:$4 sm:$0xff]   ;;  %v2595_v22 = vld [vmem:[#allocation7 + $0x198] ss:$28 sps:$4 sm:$0xff]  }
 0x14e   :  { %1735 = vmatpush1.bf16.msra.mxu0 %v2524_v24  ;;  %1817 = vmatpush1.bf16.msra.mxu1 %v2527_v25  ;;  %v2599_v24 = vld [vmem:[#allocation7 + $0x1a0] ss:$28 sps:$4 sm:$0xff]   ;;  %v2602_v25 = vld [vmem:[#allocation7 + $0x1d4] ss:$28 sps:$4 sm:$0xff]  }
 0x14f   :  { %1736 = vmatprep.subr.bf16.mxu0 %v2532_v26  ;;  %1818 = vmatprep.subr.bf16.mxu1 %v2535_v27  ;;  %v2603_v26 = vld [vmem:[#allocation7 + $0x558] ss:$28 sps:$4 sm:$0xff]   ;;  %v2600_v27 = vld [vmem:[#allocation7 + $0x1d0] ss:$28 sps:$4 sm:$0xff]  }
 0x152   :  { %1737 = vmatpush1.bf16.msra.mxu0 %v2530_v30  ;;  %1819 = vmatpush1.bf16.msra.mxu1 %v2533_v31  ;;  %v2607_v30 = vld [vmem:[#allocation7 + $0x20c] ss:$28 sps:$4 sm:$0xff]  }
 0x153   :  { %1738 = vmatprep.subr.bf16.mxu0 %v2538_v33  ;;  %1820 = vmatprep.subr.bf16.mxu1 %v2541_v34  ;;  %v2608_v31 = vld [vmem:[#allocation7 + $0x590] ss:$28 sps:$4 sm:$0xff]   ;;  %v2605_v33 = vld [vmem:[#allocation7 + $0x208] ss:$28 sps:$4 sm:$0xff]  }
 0x154   :  { %v2609_v34 = vld [vmem:[#allocation7 + $0x3d0] ss:$28 sps:$4 sm:$0xff]  }
 0x156   :  { %1739 = vmatpush1.bf16.msra.mxu0 %v2536_v36  ;;  %1821 = vmatpush1.bf16.msra.mxu1 %v2539_v37  ;;  %v2613_v36 = vld [vmem:[#allocation7 + $0x5c8] ss:$28 sps:$4 sm:$0xff]   ;;  %v2610_v37 = vld [vmem:[#allocation7 + $0x240] ss:$28 sps:$4 sm:$0xff]  }
 0x157   :  { %1740 = vmatprep.subr.bf16.mxu0 %v2544_v38  ;;  %1822 = vmatprep.subr.bf16.mxu1 %v2547_v40  ;;  %v2614_v38 = vld [vmem:[#allocation7 + $0x408] ss:$28 sps:$4 sm:$0xff]   ;;  %v2617_v40 = vld [vmem:[#allocation7 + $0x27c] ss:$28 sps:$4 sm:$0xff]  }
 0x15a   :  { %1741 = vmatpush1.bf16.msra.mxu0 %v2542_v20  ;;  %1823 = vmatpush1.bf16.msra.mxu1 %v2545_v41  ;;  %v2618_v20 = vld [vmem:[#allocation7 + $0x600] ss:$28 sps:$4 sm:$0xff]   ;;  %v2615_v41 = vld [vmem:[#allocation7 + $0x278] ss:$28 sps:$4 sm:$0xff]  }
 0x15b   :  { %1742 = vmatprep.subr.bf16.mxu0 %v2550_v43  ;;  %1824 = vmatprep.subr.bf16.mxu1 %v2553_v44  ;;  %v2619_v43 = vld [vmem:[#allocation7 + $0x440] ss:$28 sps:$4 sm:$0xff]   ;;  %v2622_v44 = vld [vmem:[#allocation7 + $0x2b4] ss:$28 sps:$4 sm:$0xff]  }
 0x15e   :  { %1743 = vmatpush1.bf16.msra.mxu0 %v2548_v32  ;;  %1825 = vmatpush1.bf16.msra.mxu1 %v2551_v45  ;;  %v2623_v32 = vld [vmem:[#allocation7 + $0x638] ss:$28 sps:$4 sm:$0xff]   ;;  %v2620_v45 = vld [vmem:[#allocation7 + $0x2b0] ss:$28 sps:$4 sm:$0xff]  }
 0x15f   :  { %1744 = vmatprep.subr.bf16.mxu0 %v2556_v46  ;;  %1826 = vmatprep.subr.bf16.mxu1 %v2559_v47  ;;  %v2624_v46 = vld [vmem:[#allocation7 + $0x478] ss:$28 sps:$4 sm:$0xff]   ;;  %v2627_v47 = vld [vmem:[#allocation7 + $0x2ec] ss:$28 sps:$4 sm:$0xff]  }
 0x162   :  { %1745 = vmatpush1.bf16.msra.mxu0 %v2554_v49  ;;  %1827 = vmatpush1.bf16.msra.mxu1 %v2557_v50  ;;  %v2625_v49 = vld [vmem:[#allocation7 + $0x2e8] ss:$28 sps:$4 sm:$0xff]   ;;  %v2629_v50 = vld [vmem:[#allocation7 + $0x4b0] ss:$28 sps:$4 sm:$0xff]  }
 0x163   :  { %1837 = vmatprep.subr.bf16.mxu0 %v2562_v51  ;;  %2287 = vmatprep.subr.bf16.mxu1 %v2563_v53  ;;  %v2632_v51 = vld [vmem:[#allocation7 + $0x324] ss:$28 sps:$4 sm:$0xff]  }
 0x164   :  { %v2633_v53 = vld [vmem:[#allocation7 + $0x6a8] ss:$28 sps:$4 sm:$0xff]  }
 0x165   :  { %1747 = vmatmul.mubr.bf16.vlgmr.msra.gmra.mrb[0].mxu0 %v2923_v54  ;;  %1829 = vmatmul.mubr.bf16.vlgmr.msra.gmra.mrb[8].mxu1 %v2923_v54 }
 0x166   :  { %1838 = vmatpush1.bf16.msra.mxu0 %v2560_v55  ;;  %1869 = vmatprep.mubr.bf16.mxu0 %v2906_v39  ;;  %v2630_v55 = vld [vmem:[#allocation7 + $0x320] ss:$28 sps:$4 sm:$0xff]  }
 0x167   :  { %2288 = vmatpush3.bf16.msra.mxu1 %v2564_v56  ;;  %1951 = vmatprep.mubr.bf16.mxu1 %v2906_v39  ;;  %v2583_v39 = vld [vmem:[#allocation7 + $0x2b8] ss:$28 sps:$4 sm:$0xff]   ;;  %v2634_v56 = vld [vmem:[#allocation7 + $0x4e8] ss:$28 sps:$4 sm:$0xff]  }
 0x168   :  { %1839 = vmatprep.subr.bf16.mxu0 %v2567_v57  ;;  %2289 = vmatprep.subr.bf16.mxu1 %v2568_v58  ;;  %v2637_v57 = vld [vmem:[#allocation7 + $0x35c] ss:$28 sps:$4 sm:$0xff]  }
 0x169   :  { %v2638_v58 = vld [vmem:[#allocation7 + $0x6e0] ss:$28 sps:$4 sm:$0xff]  }
 0x16a   :  { %1840 = vmatpush1.bf16.msra.mxu0 %v2565_v59  ;;  %v2635_v59 = vld [vmem:[#allocation7 + $0x358] ss:$28 sps:$4 sm:$0xff]  }
 0x16b   :  { %2290 = vmatpush3.bf16.msra.mxu1 %v2569_v60  ;;  %1841 = vmatprep.subr.bf16.mxu0 %v2572_v61  ;;  %v2639_v60 = vld [vmem:[#allocation7 + $0x520] ss:$28 sps:$4 sm:$0xff]   ;;  %v2642_v61 = vld [vmem:[#allocation7 + $0x394] ss:$28 sps:$4 sm:$0xff]  }
 0x16c   :  { %2291 = vmatprep.subr.bf16.mxu1 %v2573_v62  ;;  %v2640_v62 = vld [vmem:[#allocation7 + $0x390] ss:$28 sps:$4 sm:$0xff]  }
 0x16e   :  { %1842 = vmatpush1.bf16.msra.mxu0 %v2570_v63  ;;  %v2645_v63 = vld [vmem:[#allocation7 + $0x3cc] ss:$28 sps:$4 sm:$0xff]  }
 0x16f   :  { %2292 = vmatpush3.bf16.msra.mxu1 %v2574_v0  ;;  %1843 = vmatprep.subr.bf16.mxu0 %v2577_v1  ;;  %v2643_v0 = vld [vmem:[#allocation7 + $0x3c8] ss:$28 sps:$4 sm:$0xff]  }
 0x170   :  { %2293 = vmatprep.subr.bf16.mxu1 %v2578_v2  ;;  %v2648_v1 = vld [vmem:[#allocation7 + $0x404] ss:$28 sps:$4 sm:$0xff]  }
 0x171   :  { %v2646_v2 = vld [vmem:[#allocation7 + $0x400] ss:$28 sps:$4 sm:$0xff]  }
 0x172   :  { %1844 = vmatpush1.bf16.msra.mxu0 %v2575_v3  ;;  %v2651_v3 = vld [vmem:[#allocation7 + $0x43c] ss:$28 sps:$4 sm:$0xff]  }
 0x173   :  { %2294 = vmatpush3.bf16.msra.mxu1 %v2579_v4  ;;  %1845 = vmatprep.subr.bf16.mxu0 %v2582_v5  ;;  %v2649_v4 = vld [vmem:[#allocation7 + $0x438] ss:$28 sps:$4 sm:$0xff]  }
 0x174   :  { %2295 = vmatprep.subr.bf16.mxu1 %v2583_v39  ;;  %v2654_v5 = vld [vmem:[#allocation7 + $0x474] ss:$28 sps:$4 sm:$0xff]  }
 0x175   :  { %v2652_v39 = vld [vmem:[#allocation7 + $0x470] ss:$28 sps:$4 sm:$0xff]  }
 0x176   :  { %1846 = vmatpush1.bf16.msra.mxu0 %v2580_v6  ;;  %v2655_v6 = vld [vmem:[#allocation7 + $0x4a8] ss:$28 sps:$4 sm:$0xff]  }
 0x177   :  { %2296 = vmatpush3.bf16.msra.mxu1 %v2584_v7  ;;  %1847 = vmatprep.subr.bf16.mxu0 %v2587_v8  ;;  %v2660_v7 = vld [vmem:[#allocation7 + $0x4e4] ss:$28 sps:$4 sm:$0xff]   ;;  %v2663_v8 = vld [vmem:[#allocation7 + $0x51c] ss:$28 sps:$4 sm:$0xff]  }
 0x178   :  { %2297 = vmatprep.subr.bf16.mxu1 %v2588_v9  ;;  %v2661_v9 = vld [vmem:[#allocation7 + $0x518] ss:$28 sps:$4 sm:$0xff]  }
 0x17a   :  { %1848 = vmatpush1.bf16.msra.mxu0 %v2585_v10  ;;  %v2666_v10 = vld [vmem:[#allocation7 + $0x554] ss:$28 sps:$4 sm:$0xff]  }
 0x17b   :  { %2298 = vmatpush3.bf16.msra.mxu1 %v2589_v11  ;;  %1849 = vmatprep.subr.bf16.mxu0 %v2592_v12  ;;  %v2664_v11 = vld [vmem:[#allocation7 + $0x550] ss:$28 sps:$4 sm:$0xff]  }
 0x17c   :  { %2299 = vmatprep.subr.bf16.mxu1 %v2593_v13  ;;  %v2669_v12 = vld [vmem:[#allocation7 + $0x58c] ss:$28 sps:$4 sm:$0xff]  }
 0x17d   :  { %v2667_v13 = vld [vmem:[#allocation7 + $0x588] ss:$28 sps:$4 sm:$0xff]  }
 0x17e   :  { %1850 = vmatpush1.bf16.msra.mxu0 %v2590_v14  ;;  %v2672_v14 = vld [vmem:[#allocation7 + $0x5c4] ss:$28 sps:$4 sm:$0xff]  }
 0x17f   :  { %2300 = vmatpush3.bf16.msra.mxu1 %v2594_v15  ;;  %1851 = vmatprep.subr.bf16.mxu0 %v2597_v16  ;;  %v2670_v15 = vld [vmem:[#allocation7 + $0x5c0] ss:$28 sps:$4 sm:$0xff]  }
 0x180   :  { %2301 = vmatprep.subr.bf16.mxu1 %v2598_v17  ;;  %v2675_v16 = vld [vmem:[#allocation7 + $0x5fc] ss:$28 sps:$4 sm:$0xff]  }
 0x181   :  { %v2673_v17 = vld [vmem:[#allocation7 + $0x5f8] ss:$28 sps:$4 sm:$0xff]  }
 0x182   :  { %1852 = vmatpush1.bf16.msra.mxu0 %v2595_v22  ;;  %v2678_v22 = vld [vmem:[#allocation7 + $0x634] ss:$28 sps:$4 sm:$0xff]  }
 0x183   :  { %2302 = vmatpush3.bf16.msra.mxu1 %v2599_v24  ;;  %1853 = vmatprep.subr.bf16.mxu0 %v2602_v25  ;;  %v2676_v24 = vld [vmem:[#allocation7 + $0x630] ss:$28 sps:$4 sm:$0xff]  }
 0x184   :  { %2309 = vmatprep.subr.bf16.mxu1 %v2603_v26  ;;  %v2681_v25 = vld [vmem:[#allocation7 + $0x66c] ss:$28 sps:$4 sm:$0xff]  }
 0x185   :  { %v2679_v26 = vld [vmem:[#allocation7 + $0x668] ss:$28 sps:$4 sm:$0xff]  }
 0x186   :  { %1952 = vmatmul.mubr.bf16.vlgmr.msra.gmra.mrb[12].mxu1 %v2908_v42  ;;  %1854 = vmatpush1.bf16.msra.mxu0 %v2600_v27  ;;  %v2684_v27 = vld [vmem:[#allocation7 + $0x6a4] ss:$28 sps:$4 sm:$0xff]  }
 0x187   :  { %2310 = vmatpush3.bf16.msra.mxu1 %v2604_v28  ;;  %1991 = vmatprep.mubr.bf16.mxu1 %v2914_v52  ;;  %v2682_v28 = vld [vmem:[#allocation7 + $0x6a0] ss:$28 sps:$4 sm:$0xff]  }
 0x188   :  { %1855 = vmatprep.subr.bf16.mxu0 %v2607_v30  ;;  %2311 = vmatprep.subr.bf16.mxu1 %v2608_v31  ;;  %v2687_v30 = vld [vmem:[#allocation7 + $0x6dc] ss:$28 sps:$4 sm:$0xff]  }
 0x189   :  { %v2685_v31 = vld [vmem:[#allocation7 + $0x6d8] ss:$28 sps:$4 sm:$0xff]  }
 0x18a   :  { %1856 = vmatpush1.bf16.msra.mxu0 %v2605_v33  ;;  %v2938_v33 = vld [vmem:[%s2974_s4] sm:$0xff]  ;;  %s2812_s4 = smov [#allocation8]  }
 0x18b   :  { %2312 = vmatpush3.bf16.msra.mxu1 %v2609_v34  ;;  %1857 = vmatprep.subr.bf16.mxu0 %v2612_v35  ;;  %v489_v34 = vrot.slane %v2938_v33, %v73_v19  ;;  %v497_v35 = vrot.slane %v2938_v33, %v81_v23  ;;  %s2041_s8 = sshll.u32 %s2812_s4, 4  ;;  %s2042_s8 = int_to_ptr.vmem [resolvable:$true] %s2041_s8 }
 0x18c   :  { %2313 = vmatprep.subr.bf16.mxu1 %v2613_v36  ;;  %v493_v36 = vrot.slane %v2938_v33, %v77_v21  ;;  %s2776_s9 = scalar_lea.vmem %s2042_s8, 896  ;;  %p2781_p11 = scmp.lt.s32.totalorder %s2042_s8, %s2042_s8 }
 0x18d   :  { %p2777_p10 = scmp.ne.s32.totalorder %s2042_s8, %s2776_s9  ;;  %p2782_p12 = scmp.lt.s32.totalorder %s2776_s9, %s2776_s9 }
 0x18e   :  { %1858 = vmatpush1.bf16.msra.mxu0 %v2610_v37 }
 0x18f   :  { %2314 = vmatpush3.bf16.msra.mxu1 %v2614_v38  ;;  %1859 = vmatprep.subr.bf16.mxu0 %v2617_v40  ;;  %p2783_p13 = por %p2782_p12, %p2781_p11 }
 0x190   :  { %2315 = vmatprep.subr.bf16.mxu1 %v2618_v20 }
 0x191   :  { %p2784_p0 = pnand %p2783_p13, %p2777_p10 }
 0x192   :  { %1860 = vmatpush1.bf16.msra.mxu0 %v2615_v41 }
 0x193   :  { %2316 = vmatpush3.bf16.msra.mxu1 %v2619_v43  ;;  %1861 = vmatprep.subr.bf16.mxu0 %v2622_v44 }
 0x194   :  { %2317 = vmatprep.subr.bf16.mxu1 %v2623_v32 }
 0x196   :  { %1862 = vmatpush1.bf16.msra.mxu0 %v2620_v45 }
 0x197   :  { %2318 = vmatpush3.bf16.msra.mxu1 %v2624_v46  ;;  %1863 = vmatprep.subr.bf16.mxu0 %v2627_v47 }
 0x198   :  { %2319 = vmatprep.subr.bf16.mxu1 %v2628_v48 }
 0x19a   :  { %1864 = vmatpush1.bf16.msra.mxu0 %v2625_v49 }
 0x19b   :  { %2320 = vmatpush3.bf16.msra.mxu1 %v2629_v50  ;;  %1865 = vmatprep.subr.bf16.mxu0 %v2632_v51 }
 0x19c   :  { %2321 = vmatprep.subr.bf16.mxu1 %v2633_v53 }
 0x19e   :  { %1866 = vmatpush1.bf16.msra.mxu0 %v2630_v55 }
 0x19f   :  { %2322 = vmatpush3.bf16.msra.mxu1 %v2634_v56  ;;  %1867 = vmatprep.subr.bf16.mxu0 %v2637_v57 }
 0x1a0   :  { %2323 = vmatprep.subr.bf16.mxu1 %v2638_v58 }
 0x1a2   :  { %1868 = vmatpush1.bf16.msra.mxu0 %v2635_v59 }
 0x1a3   :  { %2324 = vmatpush3.bf16.msra.mxu1 %v2639_v60  ;;  %1878 = vmatprep.subr.bf16.mxu0 %v2642_v61 }
 0x1a5   :  { %1870 = vmatmul.mubr.bf16.vlgmr.msra.gmra.mrb[4].mxu0 %v2908_v42  ;;  %v2657_v42 = vld [vmem:[#allocation7 + $0x4ac] ss:$28 sps:$4 sm:$0xff]  }
 0x1a6   :  { %1992 = vmatmul.mubr.bf16.vlgmr.msra.gmra.mrb[16].mxu1 %v2923_v54  ;;  %1879 = vmatpush1.bf16.msra.mxu0 %v2640_v62 }
 0x1a7   :  { %1910 = vmatprep.mubr.bf16.mxu0 %v2914_v52  ;;  %1880 = vmatprep.subr.bf16.mxu0 %v2645_v63  ;;  %v2658_v52 = vld [vmem:[#allocation7 + $0x4e0] ss:$28 sps:$4 sm:$0xff]  }
 0x1aa   :  { %1881 = vmatpush1.bf16.msra.mxu0 %v2643_v0 }
 0x1ab   :  { %1882 = vmatprep.subr.bf16.mxu0 %v2648_v1 }
 0x1ae   :  { %1883 = vmatpush1.bf16.msra.mxu0 %v2646_v2 }
 0x1af   :  { %1884 = vmatprep.subr.bf16.mxu0 %v2651_v3 }
 0x1b2   :  { %1885 = vmatpush1.bf16.msra.mxu0 %v2649_v4  ;;  %v512_v4 = vsub.s32 6, %v2885_v18 }
 0x1b3   :  { %1886 = vmatprep.subr.bf16.mxu0 %v2654_v5 }
 0x1b4   :  { %v513_v5 = vrot.slane %v2938_v33, %v512_v4 }
 0x1b6   :  { %1887 = vmatpush1.bf16.msra.mxu0 %v2652_v39 }
 0x1b7   :  { %1888 = vmatprep.subr.bf16.mxu0 %v2657_v42 }
 0x1ba   :  { %1889 = vmatpush1.bf16.msra.mxu0 %v2655_v6 }
 0x1bb   :  { %1890 = vmatprep.subr.bf16.mxu0 %v2660_v7 }
 0x1be   :  { %1891 = vmatpush1.bf16.msra.mxu0 %v2658_v52 }
 0x1bf   :  { %1892 = vmatprep.subr.bf16.mxu0 %v2663_v8 }
 0x1c2   :  { %1893 = vmatpush1.bf16.msra.mxu0 %v2661_v9 }
 0x1c3   :  { %1894 = vmatprep.subr.bf16.mxu0 %v2666_v10 }
 0x1c6   :  { %1895 = vmatpush1.bf16.msra.mxu0 %v2664_v11 }
 0x1c7   :  { %1896 = vmatprep.subr.bf16.mxu0 %v2669_v12 }
 0x1ca   :  { %1897 = vmatpush1.bf16.msra.mxu0 %v2667_v13 }
 0x1cb   :  { %1898 = vmatprep.subr.bf16.mxu0 %v2672_v14  ;;  %v504_v14 = vsub.s32 4, %v2885_v18 }
 0x1ce   :  { %1899 = vmatpush1.bf16.msra.mxu0 %v2670_v15  ;;  %v508_v15 = vsub.s32 5, %v2885_v18 }
 0x1cf   :  { %1900 = vmatprep.subr.bf16.mxu0 %v2675_v16  ;;  %v505_v16 = vrot.slane %v2938_v33, %v504_v14 }
 0x1d2   :  { %1901 = vmatpush1.bf16.msra.mxu0 %v2673_v17  ;;  %v509_v17 = vrot.slane %v2938_v33, %v508_v15 }
 0x1d3   :  { %1902 = vmatprep.subr.bf16.mxu0 %v2678_v22 }
 0x1d6   :  { %1903 = vmatpush1.bf16.msra.mxu0 %v2676_v24 }
 0x1d7   :  { %1904 = vmatprep.subr.bf16.mxu0 %v2681_v25 }
 0x1da   :  { %1905 = vmatpush1.bf16.msra.mxu0 %v2679_v26 }
 0x1db   :  { %1906 = vmatprep.subr.bf16.mxu0 %v2684_v27 }
 0x1de   :  { %1907 = vmatpush1.bf16.msra.mxu0 %v2682_v28 }
 0x1df   :  { %1908 = vmatprep.subr.bf16.mxu0 %v2687_v30 }
 0x1e2   :  { %1909 = vmatpush1.bf16.msra.mxu0 %v2685_v31 }
 0x1e5   :  { %1911 = vmatmul.mubr.bf16.vlgmr.msra.gmra.mrb[4].mxu0 %v2923_v54  ;;  %v501_v54 = vrot.slane %v2938_v33, %v85_v29 }
 0x238   :  { %v1748_v37 = vpop.f32.mrb[0].mxu0  ;;  %v1830_v38 = vpop.f32.mrb[8].mxu1 }
 0x239   :  { %v2331_v40 = vadd.f32 %v1748_v37, %v489_v34  ;;  %v2333_v20 = vadd.f32 %v1830_v38, %v497_v35  ;;  %v1750_v41 = vpop.f32.mrb[1].mxu0  ;;  %v1832_v43 = vpop.f32.mrb[9].mxu1 }
 0x23a   :  { %v2332_v44 = vadd.f32 %v1750_v41, %v493_v36  ;;  %v2334_v19 = vadd.f32 %v1832_v43, %v501_v54  ;;  %v1752_v32 = vpop.f32.mrb[2].mxu0  ;;  %v1834_v45 = vpop.f32.mrb[10].mxu1 }
 0x23b   :  { %v1999_v46 = vmul.f32 0.5, %v2331_v40  ;;  %v2001_v23 = vmul.f32 0.5, %v2333_v20  ;;  %v1753_v47 = vpop.f32.mrb[3].mxu0  ;;  %v1835_v48 = vpop.f32.mrb[11].mxu1 }
 0x23c   :  { %v2000_v49 = vmul.f32 0.5, %v2332_v44  ;;  %v2002_v21 = vmul.f32 0.5, %v2334_v19 }
 0x23d   :  { %2696 = vtanh.f32 %v1999_v46 }
 0x23e   :  { %2698 = vtanh.f32 %v2001_v23 }
 0x23f   :  { %2700 = vtanh.f32 %v2000_v49 }
 0x240   :  { %2702 = vtanh.f32 %v2002_v21 }
 0x247   :  { %v2697_v29 = vpop.eup %2696 }
 0x248   :  { %v2699_v50 = vpop.eup %2698  ;;  %v2013_v51 = vmul.f32 0.5, %v2697_v29 }
 0x249   :  { %v2701_v53 = vpop.eup %2700  ;;  %v2015_v55 = vmul.f32 0.5, %v2699_v50 }
 0x24a   :  { %v2703_v56 = vpop.eup %2702  ;;  %v2020_v57 = vadd.f32 0.5, %v2013_v51  ;;  %v2014_v58 = vmul.f32 0.5, %v2701_v53 }
 0x24b   :  { %v2022_v59 = vadd.f32 0.5, %v2015_v55  ;;  %v2016_v60 = vmul.f32 0.5, %v2703_v56 }
 0x24c   :  { %2027 = vst [vmem:[#allocation8] sm:$0xff] %v2020_v57  ;;  %v2021_v61 = vadd.f32 0.5, %v2014_v58 }
 0x24d   :  { %2029 = vst [vmem:[#allocation8 + $0x10] sm:$0xff] %v2022_v59  ;;  %v2023_v62 = vadd.f32 0.5, %v2016_v60 }
 0x24e   :  { %2028 = vst [vmem:[#allocation8 + $0x8] sm:$0xff] %v2021_v61 }
 0x24f   :  { %2030 = vst [vmem:[#allocation8 + $0x18] sm:$0xff] %v2023_v62 }
 0x259   :  { %v2303_v63 = vpop.f32.mrb[12].mxu1 }
 0x25a   :  { %v2304_v0 = vpop.f32.mrb[13].mxu1 }
 0x25b   :  { %v2305_v1 = vadd.f32 %v2304_v0, %v2303_v63  ;;  %v2306_v2 = vpop.f32.mrb[14].mxu1 }
 0x25c   :  { %v2307_v3 = vpop.f32.mrb[15].mxu1 }
 0x25d   :  { %v1954_v6 = vadd.f32 %v2305_v1, %v513_v5 }
 0x279   :  { %v2325_v39 = vpop.f32.mrb[16].mxu1 }
 0x27a   :  { %v2326_v42 = vpop.f32.mrb[17].mxu1 }
 0x27b   :  { %v2327_v7 = vadd.f32 %v2326_v42, %v2325_v39  ;;  %v2328_v52 = vpop.f32.mrb[18].mxu1 }
 0x27c   :  { %v2329_v8 = vpop.f32.mrb[19].mxu1 }
 0x27d   :  { %v1994_v9 = vadd.f32 %v2327_v7, %v1954_v6 }
 0x27f   :  { %v2005_v10 = vmul.f32 0.5, %v1994_v9 }
 0x281   :  { %2704 = vtanh.f32 %v2005_v10 }
 0x28b   :  { %v2705_v11 = vpop.eup %2704 }
 0x28c   :  { %v2019_v12 = vmul.f32 0.5, %v2705_v11 }
 0x28e   :  { %v2026_v13 = vadd.f32 0.5, %v2019_v12 }
 0x290   :  { %2034 = vst.msk [vmem:[#allocation8 + $0x30] sm:$0xff] %vm2033_vm2, %v2026_v13 }
 0x2b8   :  { %v1912_v22 = vpop.f32.mrb[4].mxu0 }
 0x2b9   :  { %v2335_v24 = vadd.f32 %v1912_v22, %v505_v16  ;;  %v1914_v25 = vpop.f32.mrb[5].mxu0 }
 0x2ba   :  { %v2336_v26 = vadd.f32 %v1914_v25, %v509_v17  ;;  %v1916_v27 = vpop.f32.mrb[6].mxu0 }
 0x2bb   :  { %v2003_v28 = vmul.f32 0.5, %v2335_v24  ;;  %v1917_v30 = vpop.f32.mrb[7].mxu0 }
 0x2bc   :  { %v2004_v31 = vmul.f32 0.5, %v2336_v26 }
 0x2bd   :  { %2706 = vtanh.f32 %v2003_v28 }
 0x2be   :  { %2708 = vtanh.f32 %v2004_v31 }
 0x2c7   :  { %v2707_v34 = vpop.eup %2706 }
 0x2c8   :  { %v2709_v35 = vpop.eup %2708  ;;  %v2017_v36 = vmul.f32 0.5, %v2707_v34 }
 0x2c9   :  { %v2018_v18 = vmul.f32 0.5, %v2709_v35 }
 0x2ca   :  { %v2024_v54 = vadd.f32 0.5, %v2017_v36 }
 0x2cb   :  { %v2025_v37 = vadd.f32 0.5, %v2018_v18 }
 0x2cc   :  { %2031 = vst [vmem:[#allocation8 + $0x20] sm:$0xff] %v2024_v54 }
 0x2cd   :  { %2032 = vst [vmem:[#allocation8 + $0x28] sm:$0xff] %v2025_v37 }
 0x2ce   :  { %2787 = shalt.err (!%p2784_p0)
}
 0x2cf   :  { %s2788_s12 = scalar_lea.hbm %s2975_s5, 896 }
 0x2d0   :  { %p2789_p1 = scmp.ne.s32.totalorder %s2975_s5, %s2788_s12  ;;  %p2792_p2 = scmp.lt.u32.totalorder %s2788_s12, %s2975_s5 }
 0x2d2   :  { %p2794_p3 = pnand %p2792_p2, %p2789_p1 }
 0x2d4   :  { %2797 = shalt.err (!%p2794_p3)
}
 0x2d5   :  { %2044 = dma.vmem_to_hbm [thread:$0]  %s2042_s8, 896, %s2975_s5, [#allocation4]  }
 0x2d6   :  { %2802 = dma.done.wait [#allocation4], 896  }
 0x2d7   :  { %2803 = vsyncadd [#allocation4], 4294966400 }
 0x2d8   :  { %2048 = vsyncpa [#allocation3], 1 }
 0x2d9   :  { %2049 = vsyncpa [#allocation6], 1 }
 0x2da   :  { %2050 = vsyncpa [#allocation4], 1 }

</bundles_post_ra>
